<compile_context>
chip_gen: v6e
topology: v6e:2x2x1
jax: 0.10.0
libtpu: 0.0.40
codegen_flags: <defaults>
</compile_context>

<pallas_src>
import jax
import jax.numpy as jnp
from jax.experimental import pallas as pl
from jax.experimental.pallas import tpu as pltpu


_LANE = 128
_SUB = 8
_NEG = -1e30


def _round_up(x, m):
    return ((x + m - 1) // m) * m


def _vmem_budget_bytes():
    """Generation-aware VMEM limit (~3/4 of capacity, capped at 96 MiB)."""
    cap = 64 * 1024 * 1024                      # conservative default (v7x)
    try:
        info = pltpu.get_tpu_info()
        for name in ("vmem_capacity_bytes", "vmem_bytes", "vmem_size_bytes"):
            v = getattr(info, name, None)
            if v:
                cap = int(v)
                break
    except Exception:
        pass
    return max(32 * 1024 * 1024, min(cap * 3 // 4, 96 * 1024 * 1024))


def _make_kernel(Kmax, TB, T_pad, D, Hpad):
    def kernel(feat_ref, w_ref, b_ref, fcw_ref, fcb_ref, mask_ref, out_ref):
        # Packed conv: acc[b, t, :] = sum_k feat[b, t+k, :] @ W_all[k]
        # (windows with K_i < Kmax have zero weights for the missing taps).
        # T_pad % 16 == 0 -> the reshapes below are layout-free.
        acc = None
        for k in range(Kmax):
            xk = feat_ref[:, pl.ds(k, T_pad), :].reshape(TB * T_pad, D)
            p = jnp.dot(xk, w_ref[k], preferred_element_type=jnp.float32)
            acc = p if acc is None else acc + p
        # Mask time rows invalid for each window's columns, max-pool over
        # time, then bias + ReLU (equivalent to relu-before-pool: monotone).
        acc = acc.reshape(TB, T_pad, Hpad) + mask_ref[...]
        pooled = jnp.maximum(jnp.max(acc, axis=1) + b_ref[...], 0.0)  # [TB,Hpad]
        # Single fused FC over the packed (window-major) hidden slab.
        out_ref[...] = (jnp.dot(pooled.astype(jnp.bfloat16), fcw_ref[...],
                                preferred_element_type=jnp.float32)
                        + fcb_ref[...])
    return kernel


def rank_cnn_forward(x, pf1, pf2, params, window_sizes, batch_tile=None):
    window_sizes = tuple(int(k) for k in window_sizes)
    nW = len(window_sizes)
    Kmax, Kmin = max(window_sizes), min(window_sizes)

    # ---- glue: bf16 embedding gathers + feature concat (stays in JAX).
    # TODO(synk): fuse the gathers into the kernel (scalar-prefetched ids +
    # VMEM-resident tables) to remove one full HBM pass over `feat`.
    word = params['embed'].astype(jnp.bfloat16)[x]        # [B, L, word_dim]
    p1 = params['embed_pf1'].astype(jnp.bfloat16)[pf1]    # [B, L, pos_dim]
    p2 = params['embed_pf2'].astype(jnp.bfloat16)[pf2]    # [B, L, pos_dim]
    feat = jnp.concatenate([word, p1, p2], axis=-1)       # [B, L, D] bf16

    B, L, D = feat.shape
    H = params['conv_w'][0].shape[-1]
    num_labels = params['fc_b'].shape[-1]
    assert all(K <= L for K in window_sizes), "window size exceeds sentence length"

    Hall = nW * H
    Hpad = _round_up(Hall, _LANE)
    Lpad = _round_up(num_labels, _LANE)
    T_pad = _round_up(L - Kmin + 1, 16)   # pooled time rows (16 = bf16 sublane tile)
    Lp = T_pad + Kmax - 1                 # padded sentence length seen by the kernel

    # ---- weight prep: pack every window's hidden units into one 128-lane
    # slab; window i owns columns [i*H, (i+1)*H), taps k >= K_i are zero.
    w_all = jnp.zeros((Kmax, D, Hall), jnp.float32)
    b_all = jnp.zeros((1, Hall), jnp.float32)
    for i, K in enumerate(window_sizes):
        w_i = params['conv_w'][i].reshape(K, D, H)          # row k*D+d -> [k, d]
        w_all = w_all.at[:K, :, i * H:(i + 1) * H].set(w_i)
        b_all = b_all.at[:, i * H:(i + 1) * H].set(params['conv_b'][i].reshape(1, H))
    w_all = jnp.pad(w_all, ((0, 0), (0, 0), (0, Hpad - Hall))).astype(jnp.bfloat16)
    b_all = jnp.pad(b_all, ((0, 0), (0, Hpad - Hall))).astype(jnp.float32)
    fcw = jnp.pad(params['fc_w'], ((0, Hpad - Hall), (0, Lpad - num_labels))
                  ).astype(jnp.bfloat16)                    # [Hpad, Lpad]
    fcb = jnp.pad(params['fc_b'].reshape(1, num_labels),
                  ((0, 0), (0, Lpad - num_labels))).astype(jnp.float32)

    # ---- per-column time-validity mask (additive): rows t >= L-K_i+1 must
    # not win window i's max-pool; padded hidden lanes stay "valid" -> pool 0.
    thresh = jnp.full((Hpad,), T_pad + 1, jnp.int32)
    for i, K in enumerate(window_sizes):
        thresh = thresh.at[i * H:(i + 1) * H].set(L - K + 1)
    t_idx = jnp.arange(T_pad, dtype=jnp.int32)[:, None]
    mask = jnp.where(t_idx < thresh[None, :], 0.0, _NEG).astype(jnp.float32)

    # ---- batch tile: multiple of 8, generation-aware VMEM budget, and >= 2
    # grid steps when possible so v7x's two TensorCores both run.
    vmem_limit = _vmem_budget_bytes()
    const_bytes = 2 * sum(int(a.size) * a.dtype.itemsize
                          for a in (w_all, b_all, fcw, fcb, mask))
    if batch_tile is not None:
        TB = _round_up(max(1, int(batch_tile)), _SUB)
    else:
        bytes_per_row = (2 * Lp * D * 2          # double-buffered bf16 feat block
                         + 2 * Lpad * 4          # double-buffered f32 out block
                         + 3 * T_pad * Hpad * 4  # f32 acc + dot/mask temporaries
                         + 2 * T_pad * D * 2)    # bf16 shifted-slice temporaries
        budget = (vmem_limit * 4) // 5 - const_bytes - (2 << 20)
        TB = max(_SUB, (budget // bytes_per_row) // _SUB * _SUB)
        TB = min(TB, 1024)
        if _round_up(B, _SUB) > _SUB:            # keep >= 2 grid steps (v7x megacore)
            TB = min(TB, max(_SUB, _round_up((B + 1) // 2, _SUB)))
    TB = min(TB, _round_up(B, _SUB))
    B_pad = _round_up(B, TB)
    grid = (B_pad // TB,)

    # Pad batch to a TB multiple and sentence length to Lp (zeros; zero taps
    # and the -1e30 mask make the padding exact).
    feat = jnp.pad(feat, ((0, B_pad - B), (0, Lp - L), (0, 0)))

    kernel = _make_kernel(Kmax, TB, T_pad, D, Hpad)

    def _const(a):
        nd = a.ndim
        return pl.BlockSpec(a.shape, lambda i, _n=nd: (0,) * _n)

    out = pl.pallas_call(
        kernel,
        out_shape=jax.ShapeDtypeStruct((B_pad, Lpad), jnp.float32),
        grid_spec=pltpu.PrefetchScalarGridSpec(
            num_scalar_prefetch=0,
            grid=grid,
            in_specs=[pl.BlockSpec((TB, Lp, D), lambda i: (i, 0, 0)),
                      _const(w_all), _const(b_all),
                      _const(fcw), _const(fcb), _const(mask)],
            out_specs=pl.BlockSpec((TB, Lpad), lambda i: (i, 0)),
        ),
        compiler_params=pltpu.CompilerParams(
            dimension_semantics=("parallel",),
            vmem_limit_bytes=int(vmem_limit),
        ),
    )(feat, w_all, b_all, fcw, fcb, mask)

    return out[:B, :num_labels]


def reference(x, pf1, pf2, params, window_sizes):
    """Pure-JAX f32 reference mirroring the PyTorch forward exactly."""
    word = params['embed'][x]
    p1 = params['embed_pf1'][pf1]
    p2 = params['embed_pf2'][pf2]
    feat = jnp.concatenate([word, p1, p2], axis=-1).astype(jnp.float32)
    B, L, D = feat.shape
    pooled = []
    for i, K in enumerate(window_sizes):
        T = L - K + 1
        win = jnp.stack([feat[:, t:t + K, :].reshape(B, K * D) for t in range(T)],
                        axis=1)                                     # [B, T, K*D]
        s = win @ params['conv_w'][i] + params['conv_b'][i]
        s = jnp.maximum(s, 0.0)
        pooled.append(jnp.max(s, axis=1))
    cat = jnp.concatenate(pooled, axis=-1)
    return cat @ params['fc_w'] + params['fc_b']


if __name__ == "__main__":
    # Small shapes consistent with the module's forward.
    vocab, word_dim = 50, 32          # embeddings.shape
    pos_num, pos_dim = 20, 8          # args.pos_num, args.pos_dim
    hidden, label_num = 32, 4         # args.hidden_size, args.label_num
    window_sizes = (2, 3)             # args.window_size
    B, L = 20, 16                     # batch, sentence length
    D = word_dim + 2 * pos_dim

    key = jax.random.PRNGKey(0)
    keys = jax.random.split(key, 16)

    params = {
        'embed':     0.1 * jax.random.normal(keys[0], (vocab, word_dim), jnp.float32),
        'embed_pf1': 0.1 * jax.random.normal(keys[1], (pos_num, pos_dim), jnp.float32),
        'embed_pf2': 0.1 * jax.random.normal(keys[2], (pos_num, pos_dim), jnp.float32),
        # Conv2d weight [H, 1, K, D] pre-flattened/transposed to [K*D, H]
        'conv_w': [0.1 * jax.random.normal(keys[3 + i], (K * D, hidden), jnp.float32)
                   for i, K in enumerate(window_sizes)],
        'conv_b': [0.1 * jax.random.normal(keys[6 + i], (1, hidden), jnp.float32)
                   for i, _ in enumerate(window_sizes)],
        # Linear(nW*H -> label_num): weight stored transposed as [nW*H, label_num]
        'fc_w': 0.1 * jax.random.normal(keys[8], (len(window_sizes) * hidden, label_num),
                                        jnp.float32),
        'fc_b': 0.1 * jax.random.normal(keys[9], (1, label_num), jnp.float32),
    }

    x = jax.random.randint(keys[10], (B, L), 0, vocab)
    pf1 = jax.random.randint(keys[11], (B, L), 0, pos_num)
    pf2 = jax.random.randint(keys[12], (B, L), 0, pos_num)

    ref = reference(x, pf1, pf2, params, window_sizes)

    # Multi-step grid with batch-remainder padding (TB=8 -> B_pad=24, grid=(3,)).
    logits = rank_cnn_forward(x, pf1, pf2, params, window_sizes, batch_tile=8)
    jax.block_until_ready(logits)
    assert logits.shape == (B, label_num)
    # bf16 data path inside the kernel -> relaxed tolerance vs f32 reference.
    assert jnp.allclose(logits, ref, atol=2e-2, rtol=2e-2), "mismatch (batch_tile=8)"

    # Auto-sized tile (exercises generation-aware sizing + >=2-step rule).
    logits_auto = rank_cnn_forward(x, pf1, pf2, params, window_sizes)
    jax.block_until_ready(logits_auto)
    assert jnp.allclose(logits_auto, ref, atol=2e-2, rtol=2e-2), "mismatch (auto tile)"

    print("KERNEL_OK")
</pallas_src>

<mosaic_0001>
module attributes {stable_mosaic.version = 11 : i64} {
  func.func @kernel(%arg0: i32, %arg1: memref<8x18x48xbf16, #tpu.memory_space<vmem>>, %arg2: memref<3x48x128xbf16, #tpu.memory_space<vmem>>, %arg3: memref<1x128xf32, #tpu.memory_space<vmem>>, %arg4: memref<128x128xbf16, #tpu.memory_space<vmem>>, %arg5: memref<1x128xf32, #tpu.memory_space<vmem>>, %arg6: memref<16x128xf32, #tpu.memory_space<vmem>>, %arg7: memref<8x128xf32, #tpu.memory_space<vmem>>) attributes {dimension_semantics = [#tpu.dimension_semantics<parallel>], iteration_bounds = array<i64: 3>, scalar_prefetch = 0 : i64, scratch_operands = 0 : i64, tpu.core_type = #tpu.core_type<tc>, window_params = [{transform_indices = @transform_0, window_bounds = array<i64: 8, 18, 48>}, {pipeline_mode = #tpu.pipeline_mode<synchronous>, transform_indices = @transform_1, window_bounds = array<i64: 3, 48, 128>}, {pipeline_mode = #tpu.pipeline_mode<synchronous>, transform_indices = @transform_2, window_bounds = array<i64: 1, 128>}, {pipeline_mode = #tpu.pipeline_mode<synchronous>, transform_indices = @transform_3, window_bounds = array<i64: 128, 128>}, {pipeline_mode = #tpu.pipeline_mode<synchronous>, transform_indices = @transform_4, window_bounds = array<i64: 1, 128>}, {pipeline_mode = #tpu.pipeline_mode<synchronous>, transform_indices = @transform_5, window_bounds = array<i64: 16, 128>}, {transform_indices = @transform_6, window_bounds = array<i64: 8, 128>}]} {
    %c0 = arith.constant 0 : index
    %c0_0 = arith.constant 0 : index
    %c0_1 = arith.constant 0 : index
    %0 = vector.load %arg1[%c0, %c0_0, %c0_1] : memref<8x18x48xbf16, #tpu.memory_space<vmem>>, vector<8x16x48xbf16>
    %1 = vector.shape_cast %0 : vector<8x16x48xbf16> to vector<128x48xbf16>
    %c0_2 = arith.constant 0 : index
    %c0_3 = arith.constant 0 : index
    %c0_4 = arith.constant 0 : index
    %2 = vector.load %arg2[%c0_2, %c0_3, %c0_4] : memref<3x48x128xbf16, #tpu.memory_space<vmem>>, vector<1x48x128xbf16>
    %3 = vector.shape_cast %2 : vector<1x48x128xbf16> to vector<48x128xbf16>
    %cst = arith.constant dense<0.000000e+00> : vector<128x128xf32>
    %4 = tpu.matmul %1, %3, %cst {dimension_numbers = #tpu.dot_dimension_numbers<[1], [0], [0], [1], [0, 0, 1, 1], [], []>} : vector<128x48xbf16>, vector<48x128xbf16>, vector<128x128xf32> -> vector<128x128xf32>
    %c0_5 = arith.constant 0 : index
    %c1 = arith.constant 1 : index
    %c0_6 = arith.constant 0 : index
    %5 = vector.load %arg1[%c0_5, %c1, %c0_6] : memref<8x18x48xbf16, #tpu.memory_space<vmem>>, vector<8x16x48xbf16>
    %6 = vector.shape_cast %5 : vector<8x16x48xbf16> to vector<128x48xbf16>
    %c1_7 = arith.constant 1 : index
    %c0_8 = arith.constant 0 : index
    %c0_9 = arith.constant 0 : index
    %7 = vector.load %arg2[%c1_7, %c0_8, %c0_9] : memref<3x48x128xbf16, #tpu.memory_space<vmem>>, vector<1x48x128xbf16>
    %8 = vector.shape_cast %7 : vector<1x48x128xbf16> to vector<48x128xbf16>
    %cst_10 = arith.constant dense<0.000000e+00> : vector<128x128xf32>
    %9 = tpu.matmul %6, %8, %cst_10 {dimension_numbers = #tpu.dot_dimension_numbers<[1], [0], [0], [1], [0, 0, 1, 1], [], []>} : vector<128x48xbf16>, vector<48x128xbf16>, vector<128x128xf32> -> vector<128x128xf32>
    %10 = arith.addf %4, %9 : vector<128x128xf32>
    %c0_11 = arith.constant 0 : index
    %c2 = arith.constant 2 : index
    %c0_12 = arith.constant 0 : index
    %11 = vector.load %arg1[%c0_11, %c2, %c0_12] : memref<8x18x48xbf16, #tpu.memory_space<vmem>>, vector<8x16x48xbf16>
    %12 = vector.shape_cast %11 : vector<8x16x48xbf16> to vector<128x48xbf16>
    %c2_13 = arith.constant 2 : index
    %c0_14 = arith.constant 0 : index
    %c0_15 = arith.constant 0 : index
    %13 = vector.load %arg2[%c2_13, %c0_14, %c0_15] : memref<3x48x128xbf16, #tpu.memory_space<vmem>>, vector<1x48x128xbf16>
    %14 = vector.shape_cast %13 : vector<1x48x128xbf16> to vector<48x128xbf16>
    %cst_16 = arith.constant dense<0.000000e+00> : vector<128x128xf32>
    %15 = tpu.matmul %12, %14, %cst_16 {dimension_numbers = #tpu.dot_dimension_numbers<[1], [0], [0], [1], [0, 0, 1, 1], [], []>} : vector<128x48xbf16>, vector<48x128xbf16>, vector<128x128xf32> -> vector<128x128xf32>
    %16 = arith.addf %10, %15 : vector<128x128xf32>
    %17 = vector.shape_cast %16 : vector<128x128xf32> to vector<8x16x128xf32>
    %c0_17 = arith.constant 0 : index
    %c0_18 = arith.constant 0 : index
    %18 = vector.load %arg6[%c0_17, %c0_18] : memref<16x128xf32, #tpu.memory_space<vmem>>, vector<16x128xf32>
    %19 = vector.shape_cast %18 : vector<16x128xf32> to vector<1x16x128xf32>
    %20 = vector.broadcast %19 : vector<1x16x128xf32> to vector<8x16x128xf32>
    %21 = arith.addf %17, %20 : vector<8x16x128xf32>
    %cst_19 = arith.constant dense<0xFF800000> : vector<8x128xf32>
    %22 = vector.multi_reduction <maximumf>, %21, %cst_19 [1] : vector<8x16x128xf32> to vector<8x128xf32>
    %c0_20 = arith.constant 0 : index
    %c0_21 = arith.constant 0 : index
    %23 = vector.load %arg3[%c0_20, %c0_21] : memref<1x128xf32, #tpu.memory_space<vmem>>, vector<1x128xf32>
    %24 = vector.broadcast %23 : vector<1x128xf32> to vector<8x128xf32>
    %25 = arith.addf %22, %24 : vector<8x128xf32>
    %cst_22 = arith.constant 0.000000e+00 : f32
    %26 = vector.broadcast %cst_22 : f32 to vector<8x128xf32>
    %27 = arith.maximumf %25, %26 : vector<8x128xf32>
    %28 = arith.truncf %27 : vector<8x128xf32> to vector<8x128xbf16>
    %c0_23 = arith.constant 0 : index
    %c0_24 = arith.constant 0 : index
    %29 = vector.load %arg4[%c0_23, %c0_24] : memref<128x128xbf16, #tpu.memory_space<vmem>>, vector<128x128xbf16>
    %cst_25 = arith.constant dense<0.000000e+00> : vector<8x128xf32>
    %30 = tpu.matmul %28, %29, %cst_25 {dimension_numbers = #tpu.dot_dimension_numbers<[1], [0], [0], [1], [0, 0, 1, 1], [], []>} : vector<8x128xbf16>, vector<128x128xbf16>, vector<8x128xf32> -> vector<8x128xf32>
    %c0_26 = arith.constant 0 : index
    %c0_27 = arith.constant 0 : index
    %31 = vector.load %arg5[%c0_26, %c0_27] : memref<1x128xf32, #tpu.memory_space<vmem>>, vector<1x128xf32>
    %32 = vector.broadcast %31 : vector<1x128xf32> to vector<8x128xf32>
    %33 = arith.addf %30, %32 : vector<8x128xf32>
    %c0_28 = arith.constant 0 : index
    %c0_29 = arith.constant 0 : index
    %34 = vector.load %arg7[%c0_28, %c0_29] : memref<8x128xf32, #tpu.memory_space<vmem>>, vector<8x128xf32>
    tpu.vector_store %arg7[%c0_28, %c0_29], %33 {strides = array<i32>} : memref<8x128xf32, #tpu.memory_space<vmem>>, vector<8x128xf32>,
    return
  }
  func.func @transform_0(%arg0: i32) -> (i32, i32, i32) {
    %c0_i32 = arith.constant 0 : i32
    %c0_i32_0 = arith.constant 0 : i32
    %c0_i32_1 = arith.constant 0 : i32
    return %arg0, %c0_i32, %c0_i32_0 : i32, i32, i32
  }
  func.func @transform_1(%arg0: i32) -> (i32, i32, i32) {
    %c0_i32 = arith.constant 0 : i32
    %c0_i32_0 = arith.constant 0 : i32
    %c0_i32_1 = arith.constant 0 : i32
    %c0_i32_2 = arith.constant 0 : i32
    return %c0_i32, %c0_i32_0, %c0_i32_1 : i32, i32, i32
  }
  func.func @transform_2(%arg0: i32) -> (i32, i32) {
    %c0_i32 = arith.constant 0 : i32
    %c0_i32_0 = arith.constant 0 : i32
    %c0_i32_1 = arith.constant 0 : i32
    return %c0_i32, %c0_i32_0 : i32, i32
  }
  func.func @transform_3(%arg0: i32) -> (i32, i32) {
    %c0_i32 = arith.constant 0 : i32
    %c0_i32_0 = arith.constant 0 : i32
    %c0_i32_1 = arith.constant 0 : i32
    return %c0_i32, %c0_i32_0 : i32, i32
  }
  func.func @transform_4(%arg0: i32) -> (i32, i32) {
    %c0_i32 = arith.constant 0 : i32
    %c0_i32_0 = arith.constant 0 : i32
    %c0_i32_1 = arith.constant 0 : i32
    return %c0_i32, %c0_i32_0 : i32, i32
  }
  func.func @transform_5(%arg0: i32) -> (i32, i32) {
    %c0_i32 = arith.constant 0 : i32
    %c0_i32_0 = arith.constant 0 : i32
    %c0_i32_1 = arith.constant 0 : i32
    return %c0_i32, %c0_i32_0 : i32, i32
  }
  func.func @transform_6(%arg0: i32) -> (i32, i32) {
    %c0_i32 = arith.constant 0 : i32
    %c0_i32_0 = arith.constant 0 : i32
    return %arg0, %c0_i32 : i32, i32
  }
}

</mosaic_0001>

<bundles_post_ra>
// kernel: tpu_custom_call.1
= control target key start
LH: loop header
LB: loop body
LE: loop exit
PB: predicated region body
PF: predicated region fallthrough
CT: control target
= control target key end

     0   :  { %11 = vsyncpa [#allocation3], 0  ;;  %s2311_s0 = inlined_call_operand.vmem [shape: bf16[24,18,48], index: 0, kind: input, shape index: {}]   ;;  %s2312_s1 = inlined_call_operand.vmem [shape: bf16[3,48,128], index: 1, kind: input, shape index: {}]   ;;  %s2313_s2 = inlined_call_operand.vmem [shape: f32[1,128], index: 2, kind: input, shape index: {}]   ;;  %s2314_s3 = inlined_call_operand.vmem [shape: bf16[128,128], index: 3, kind: input, shape index: {}]   ;;  %s2315_s4 = inlined_call_operand.vmem [shape: f32[1,128], index: 4, kind: input, shape index: {}]   ;;  %s2316_s5 = inlined_call_operand.vmem [shape: f32[16,128], index: 5, kind: input, shape index: {}]   ;;  %s2317_s6 = inlined_call_operand.hbm [shape: f32[24,128], index: 6, kind: output, shape index: {}]  }
   0x1   :  { %13 = vsyncpa [#allocation3 + $0x1], 0  ;;  %s1828_s21 = smov 0   ;;  %s1830_s22 = smov 0  }
   0x2   :  { %s1832_s23 = smov 0   ;;  %s1834_s24 = smov 0  }
   0x3 LB: > { %s1849_s25 = sadd.s32 4294967295, %s1788_s24   ;;  %s1429_s26 = sadd.s32 4294967294, %s1788_s24   ;;  %s1788_s24 = sphi %s1834_s24, %s2327_s24   ;;  %s1784_s23 = sphi %s1832_s23, %s2326_s23   ;;  %s1780_s22 = sphi %s1830_s22, %s2325_s22   ;;  %s1776_s21 = sphi %s1828_s21, %s2324_s21  }
   0x4   : > { %s1853_s27 = sadd.s32 1, %s1788_s24   ;;  %s157_s28 = sadd.s32 1, %s1784_s23 }
   0x5   : > { %s154_s29 = ssub.s32 %s1788_s24, %s1853_s27  ;;  %p167_p0 = scmp.ne.s32.totalorder %s1784_s23, %s1780_s22 }
   0x6   : > { %p155_p1 = scmp.eq.s32.totalorder %s154_s29, 0  ;;  %p168_p2 = scmp.eq.s32.totalorder %s1849_s25, 2 }
   0x7   : > { %p173_p3 = scmp.ne.s32.totalorder %s1780_s22, %s1776_s21  ;;  %p174_p4 = scmp.eq.s32.totalorder %s1429_s26, 2 }
   0x8   : > { %s1864_s30 = scalar_select %p155_p1, %s1784_s23, %s157_s28  }
   0x9   : > { %p1866_p5 = por %p168_p2, %p167_p0  ;;  %p1870_p6 = por %p174_p4, %p173_p3 }
   0xa   : > { %p1432_p7 = scmp.ge.s32.totalorder %s1788_s24, 1  ;;  %p217_p8 = scmp.lt.s32.totalorder %s1788_s24, 4 }
   0xc   : > { %p218_p9 = pnand %p1432_p7, %p217_p8 }
   0xd   : > { %s1434_s11 = sshll.u32 (!%p218_p9), %s1849_s25, 3  ;;  %s245_s9 = sand.u32 (!%p218_p9), 1, %s1780_s22  }
   0xe   : > { %221 = sbr.rel (%p218_p9) target bundleno = 539 (0x21b), region = 44  ;;  %p249_p10 = scmp.lt.s32.totalorder (!%p218_p9), %s1434_s11, 23 }
   0xf   : > { %s1433_s10 = sshll.u32 (!%p218_p9), %s245_s9, 3  ;;  %s1524_s13 = sshll.u32 (!%p218_p9), %s1849_s25, 7 }
  0x10   : > { %s247_s14 = scalar_lea.vmem (!%p218_p9), [#allocation2], %s1433_s10  ;;  %s2270_s18 = scalar_lea.hbm (!%p218_p9), %s2317_s6, %s1524_s13 }
  0x11   : > { %s1370_s15 = sshll.u32 (!%p218_p9), %s247_s14, 4  ;;  %s1357_s19 = scalar_lea.sflag (!%p218_p9), [#allocation3], %s245_s9  ;;  %s2272_s15 = int_to_ptr.vmem [resolvable:$true] %s1370_s15 }
  0x12   : > { %s1728_s20 = scalar_lea.vmem (!%p218_p9), %s2272_s15, 128  ;;  %s1792_s25 = smov (!%p218_p9), [#allocation2]  }
  0x13   : > { %v1703_v0 = vld [vmem:[%s2312_s1 + $0x28] sm:$0xff]   ;;  %v1704_v1 = vld [vmem:[%s2312_s1 + $0x20] sm:$0xff]   ;;  %v1705_v2 = vld [vmem:[%s2312_s1 + $0x18] sm:$0xff]   ;;  %s2329_s11 = smov (!%p249_p10, %s1434_s11), 23  ;;  %vm286_vm0 = vsmask.f32 3328  ;;  %p1729_p11 = scmp.ne.s32.totalorder %s2272_s15, %s1728_s20 }
  0x14   : > { %1655 = vmatprep.subr.bf16.mxu1 %v1703_v0  ;;  %1569 = vmatprep.subr.bf16.mxu0 %v1703_v0  ;;  %vm287_vm1 = vsmask.f32 7440  ;;  %s1661_s16 = smul.u32 12, %s2329_s11  ;;  %v1889_v3 = vld [vmem:[%s2312_s1 + $0x10] sm:$0xff]   ;;  %v1899_v4 = vld [vmem:[%s2312_s1 + $0x40] sm:$0xff]   ;;  %vm530_vm3 = vcmask 392192  }
  0x15   : > { %1658 = vmatpush3.bf16.msra.mxu1 %v1703_v0  ;;  %1570 = vmatpush3.bf16.msra.mxu0 %v1703_v0  ;;  %vm1939_vm2 = vmor %vm286_vm0, %vm287_vm1  ;;  %vm855_vm4 = vcmask 1042432   ;;  %vm856_vm5 = vcmask 1046532   ;;  %vm1791_vm7 = vmmov 0   ;;  %vm1245_vm8 = vcmask 1041409   ;;  %p1730_p12 = pnand %p1729_p11, %p1866_p5 }
  0x16   : > { %1656 = vmatprep.subr.bf16.mxu1 %v1704_v1  ;;  %1571 = vmatprep.subr.bf16.mxu0 %v1704_v1  ;;  %s1894_s26 = scalar_lea.vmem %s2311_s0, %s1661_s16  ;;  %vm2070_vm6 = vmor %vm855_vm4, %vm856_vm5  ;;  %vm1248_vm9 = vcmask 1042434   ;;  %vm1251_vm10 = vcmask 1043459   ;;  %vm1254_vm11 = vcmask 1044484   ;;  %vm1257_vm12 = vcmask 1045509  }
  0x17   : > { %v1902_v5 = vld [vmem:[%s1894_s26] sm:$0xf]  ;;  %v1905_v6 = vld [vmem:[%s1894_s26 + $0x4] sm:$0xf]  ;;  %v1908_v7 = vld [vmem:[%s1894_s26 + $0x8] sm:$0x1]  ;;  %p1731_p13 = pneg %p1730_p12 }
  0x18   : > { %v290_v8 = vshrl.u32 %v1902_v5, 16  ;;  %v293_v9 = vshll.u32 %v1902_v5, 16  ;;  %v299_v10 = vshll.u32 %v1905_v6, 16  ;;  %v303_v11 = vshrl.u32 %v1905_v6, 16  ;;  %v1915_v12 = vld [vmem:[%s1894_s26 + $0x30] sm:$0xf] }
  0x19   : > { %1659 = vmatpush3.bf16.msra.mxu1 %v1704_v1  ;;  %1572 = vmatpush3.bf16.msra.mxu0 %v1704_v1  ;;  %v309_v13 = vshll.u32 %v1908_v7, 16  ;;  %v1919_v14 = vld [vmem:[%s1894_s26 + $0x34] sm:$0xf]  ;;  %v1922_v15 = vld [vmem:[%s1894_s26 + $0x38] sm:$0x1]  ;;  %v386_v21 = vshrl.u32 %v1915_v12, 16 }
  0x1a   : > { %1657 = vmatprep.subr.bf16.mxu1 %v1705_v2  ;;  %1573 = vmatprep.subr.bf16.mxu0 %v1705_v2  ;;  %v292_v16 = vrot.slane %v290_v8, 4  ;;  %v295_v17 = vrot.slane %v293_v9, 5  ;;  %v301_v18 = vrot.slane %v299_v10, 5  ;;  %v305_v19 = vrot.slane %v303_v11, 4  ;;  %v1932_v28 = vld [vmem:[%s1894_s26 + $0xc] sm:$0xf] }
  0x1b   : > { %v311_v20 = vrot.slane %v309_v13, 5  ;;  %v389_v22 = vshll.u32 %v1915_v12, 16  ;;  %v395_v23 = vshll.u32 %v1919_v14, 16  ;;  %v399_v26 = vshrl.u32 %v1919_v14, 16  ;;  %v1935_v29 = vld [vmem:[%s1894_s26 + $0x10] sm:$0xf] }
  0x1c   : > { %v296_v24 = vor.u32 %v295_v17, %v292_v16  ;;  %v306_v25 = vor.u32 %v305_v19, %v301_v18  ;;  %v405_v27 = vshll.u32 %v1922_v15, 16  ;;  %v388_v31 = vrot.slane %v386_v21, 4  ;;  %v1944_v39 = vld [vmem:[%s1894_s26 + $0x14] sm:$0x1]  ;;  %v1955_v51 = vld [vmem:[%s1894_s26 + $0x3c] sm:$0xf] }
  0x1d   : > { %1660 = vmatpush3.bf16.msra.mxu1 %v1705_v2  ;;  %1574 = vmatpush3.bf16.msra.mxu0 %v1705_v2  ;;  %v391_v32 = vrot.slane %v389_v22, 5  ;;  %v397_v33 = vrot.slane %v395_v23, 5  ;;  %v401_v36 = vrot.slane %v399_v26, 4  ;;  %v314_v40 = vshrl.u32 %v1932_v28, 16  ;;  %v1959_v56 = vld [vmem:[%s1894_s26 + $0x40] sm:$0xf] }
  0x1e   : > { %1591 = vmatprep.subr.bf16.mxu1 %v1889_v3  ;;  %1613 = vmatprep.subr.bf16.mxu0 %v1899_v4  ;;  %v297_v34 = vrot.slane %v296_v24, 4  ;;  %v307_v35 = vrot.slane %v306_v25, 4  ;;  %v407_v37 = vrot.slane %v405_v27, 5  ;;  %v317_v41 = vshll.u32 %v1932_v28, 16  ;;  %v1967_v61 = vld [vmem:[%s1894_s26 + $0x44] sm:$0x1] }
  0x1f   : > { %v392_v38 = vor.u32 %v391_v32, %v388_v31  ;;  %v323_v42 = vshll.u32 %v1935_v29, 16  ;;  %v402_v45 = vor.u32 %v401_v36, %v397_v33  ;;  %v327_v46 = vshrl.u32 %v1935_v29, 16  ;;  %v1973_v2 = vld [vmem:[%s1894_s26 + $0x18] sm:$0xf]  ;;  %v1978_v13 = vld [vmem:[%s1894_s26 + $0x1c] sm:$0xf] }
  0x20   : > { %v302_v43 = vsel %vm1939_vm2, %v297_v34, %v301_v18  ;;  %v312_v44 = vsel %vm1939_vm2, %v307_v35, %v311_v20  ;;  %v316_v49 = vrot.slane %v314_v40, 4  ;;  %v319_v50 = vrot.slane %v317_v41, 5  ;;  %v1983_v20 = vld [vmem:[%s1894_s26 + $0x20] sm:$0x1]  ;;  %v1990_v25 = vld [vmem:[%s1894_s26 + $0x48] sm:$0xf] }
  0x21   : > { %v1442_v47 = vcombine.low %v302_v43, %v312_v44  ;;  %v393_v48 = vrot.slane %v392_v38, 4  ;;  %v403_v52 = vrot.slane %v402_v45, 4  ;;  %v325_v53 = vrot.slane %v323_v42, 5  ;;  %v1709_v34 = vld [vmem:[%s2312_s1 + $0x38] sm:$0xff]  }
  0x22   : > { %v329_v54 = vrot.slane %v327_v46, 4  ;;  %v333_v55 = vshll.u32 %v1944_v39, 16  ;;  %v863_v57 = vrot.slane %v1908_v7, 5  ;;  %v320_v59 = vor.u32 %v319_v50, %v316_v49 }
  0x23   : > { %1575 = vmatprep.mubr.msk.bf16.mxu0 %vm530_vm3, %v1442_v47  ;;  %v398_v58 = vsel %vm1939_vm2, %v393_v48, %v397_v33  ;;  %v867_v60 = vrot.slane %v1935_v29, 5  ;;  %v408_v62 = vsel %vm1939_vm2, %v403_v52, %v407_v37  ;;  %v410_v1 = vshrl.u32 %v1955_v51, 16  ;;  %v1996_v33 = vld [vmem:[%s1894_s26 + $0x4c] sm:$0xf] }
  0x24   : > { %v330_v63 = vor.u32 %v329_v54, %v325_v53  ;;  %v335_v0 = vrot.slane %v333_v55, 5  ;;  %v1446_v8 = vcombine.low %v398_v58, %v408_v62  ;;  %v321_v9 = vrot.slane %v320_v59, 4  ;;  %v2015_v62 = vld [vmem:[%s1894_s26 + $0x24] sm:$0xf] }
  0x25   : > { %v413_v10 = vshll.u32 %v1955_v51, 16  ;;  %v419_v11 = vshll.u32 %v1959_v56, 16  ;;  %v412_v17 = vrot.slane %v410_v1, 4  ;;  %v423_v18 = vshrl.u32 %v1959_v56, 16 }
  0x26   : > { %v331_v16 = vrot.slane %v330_v63, 4  ;;  %v429_v19 = vshll.u32 %v1967_v61, 16  ;;  %1583 = vmatprep.mubr.msk.bf16.mxu1 %vm530_vm3, %v1446_v8  ;;  %v326_v21 = vsel %vm1939_vm2, %v321_v9, %v325_v53  ;;  %v338_v24 = vshrl.u32 %v1973_v2, 16  ;;  %v2009_v53 = vld [vmem:[%s1894_s26 + $0x50] sm:$0x1] }
  0x27   : > { %v415_v22 = vrot.slane %v413_v10, 5  ;;  %v421_v23 = vrot.slane %v419_v11, 5  ;;  %v425_v27 = vrot.slane %v423_v18, 4  ;;  %v341_v32 = vshll.u32 %v1973_v2, 16  ;;  %v2027_v10 = vld [vmem:[%s1894_s26 + $0x28] sm:$0xf] }
  0x28   : > { %v336_v26 = vsel %vm1939_vm2, %v331_v16, %v335_v0  ;;  %v431_v31 = vrot.slane %v429_v19, 5  ;;  %v340_v37 = vrot.slane %v338_v24, 4  ;;  %v347_v38 = vshll.u32 %v1978_v13, 16  ;;  %v1708_v0 = vld [vmem:[%s2312_s1 + $0x8] sm:$0xff]  }
  0x29   : > { %v1443_v35 = vcombine.low %v326_v21, %v336_v26  ;;  %v416_v36 = vor.u32 %v415_v22, %v412_v17  ;;  %v426_v40 = vor.u32 %v425_v27, %v421_v23  ;;  %v343_v41 = vrot.slane %v341_v32, 5  ;;  %v2031_v19 = vld [vmem:[%s1894_s26 + $0x2c] sm:$0x1]  ;;  %v2034_v21 = vld [vmem:[%s1894_s26 + $0x54] sm:$0xf] }
  0x2a   : > { %v351_v42 = vshrl.u32 %v1978_v13, 16  ;;  %v357_v43 = vshll.u32 %v1983_v20, 16  ;;  %v349_v45 = vrot.slane %v347_v38, 5  ;;  %v434_v46 = vshrl.u32 %v1990_v25, 16  ;;  %v2040_v27 = vld [vmem:[%s1894_s26 + $0x58] sm:$0xf] }
  0x2b   : > { %1576 = vmatmul.mubr.msk.bf16.vlgmr.msra.gmra.mxu0 %vm530_vm3, %v1443_v35  ;;  %v417_v44 = vrot.slane %v416_v36, 4  ;;  %v437_v47 = vshll.u32 %v1990_v25, 16  ;;  %v427_v48 = vrot.slane %v426_v40, 4  ;;  %v344_v49 = vor.u32 %v343_v41, %v340_v37  ;;  %v1710_v37 = vld [vmem:[%s2312_s1] sm:$0xff]  }
  0x2c   : > { %1614 = vmatpush3.bf16.msra.mxu0 %v1899_v4  ;;  %v353_v50 = vrot.slane %v351_v42, 4  ;;  %v359_v52 = vrot.slane %v357_v43, 5  ;;  %v436_v55 = vrot.slane %v434_v46, 4  ;;  %v443_v59 = vshll.u32 %v1996_v33, 16  ;;  %v1711_v4 = vld [vmem:[%s2312_s1 + $0x30] sm:$0xff]  }
  0x2d   : > { %v422_v54 = vsel %vm1939_vm2, %v417_v44, %v421_v23  ;;  %v439_v58 = vrot.slane %v437_v47, 5  ;;  %1615 = vmatprep.subr.bf16.mxu0 %v1709_v34  ;;  %v432_v63 = vsel %vm1939_vm2, %v427_v48, %v431_v31  ;;  %v345_v1 = vrot.slane %v344_v49, 4  ;;  %v2055_v46 = vld [vmem:[%s1894_s26 + $0x5c] sm:$0x1]  ;;  %v831_v47 = vld [vmem:[%s1894_s26] sm:$0xe] }
  0x2e   : > { %v354_v8 = vor.u32 %v353_v50, %v349_v45  ;;  %v447_v9 = vshrl.u32 %v1996_v33, 16  ;;  %v1447_v11 = vcombine.low %v422_v54, %v432_v63  ;;  %v445_v17 = vrot.slane %v443_v59, 5  ;;  %v832_v59 = vld [vmem:[%s1894_s26 + $0xc] sm:$0xe] }
  0x2f   : > { %v440_v16 = vor.u32 %v439_v58, %v436_v55  ;;  %v453_v18 = vshll.u32 %v2009_v53, 16  ;;  %v350_v22 = vsel %vm1939_vm2, %v345_v1, %v349_v45  ;;  %v362_v26 = vshrl.u32 %v2015_v62, 16 }
  0x30   : > { %v355_v23 = vrot.slane %v354_v8, 4  ;;  %v449_v24 = vrot.slane %v447_v9, 4  ;;  %1616 = vmatpush3.bf16.msra.mxu0 %v1709_v34  ;;  %1584 = vmatmul.mubr.msk.bf16.vlgmr.msra.gmra.mxu1 %vm530_vm3, %v1447_v11  ;;  %v365_v35 = vshll.u32 %v2015_v62, 16  ;;  %v371_v36 = vshll.u32 %v2027_v10, 16 }
  0x31   : > { %v441_v31 = vrot.slane %v440_v16, 4  ;;  %v455_v32 = vrot.slane %v453_v18, 5  ;;  %1617 = vmatprep.subr.bf16.mxu0 %v1711_v4  ;;  %1592 = vmatpush3.bf16.msra.mxu1 %v1889_v3  ;;  %v364_v40 = vrot.slane %v362_v26, 4  ;;  %v375_v41 = vshrl.u32 %v2027_v10, 16  ;;  %v833_v26 = vld [vmem:[%s1894_s26 + $0x18] sm:$0xe] }
  0x32   : > { %v360_v34 = vsel %vm1939_vm2, %v355_v23, %v359_v52  ;;  %v450_v38 = vor.u32 %v449_v24, %v445_v17  ;;  %1593 = vmatprep.subr.bf16.mxu1 %v1708_v0  ;;  %v367_v44 = vrot.slane %v365_v35, 5  ;;  %v373_v45 = vrot.slane %v371_v36, 5  ;;  %v1725_v24 = vld [vmem:[%s2314_s3 + $0x10] sm:$0xff]  }
  0x33   : > { %v1444_v42 = vcombine.low %v350_v22, %v360_v34  ;;  %v446_v43 = vsel %vm1939_vm2, %v441_v31, %v445_v17  ;;  %v377_v3 = vrot.slane %v375_v41, 4  ;;  %v381_v49 = vshll.u32 %v2031_v19, 16 }
  0x34   : > { %v451_v48 = vrot.slane %v450_v38, 4  ;;  %v458_v50 = vshrl.u32 %v2034_v21, 16  ;;  %1618 = vmatpush3.bf16.msra.mxu0 %v1711_v4  ;;  %v368_v52 = vor.u32 %v367_v44, %v364_v40  ;;  %v461_v54 = vshll.u32 %v2034_v21, 16 }
  0x35   : > { %1579 = vmatprep.mubr.msk.bf16.mxu0 %vm530_vm3, %v1444_v42  ;;  %v467_v55 = vshll.u32 %v2040_v27, 16  ;;  %v471_v58 = vshrl.u32 %v2040_v27, 16  ;;  %1594 = vmatpush3.bf16.msra.mxu1 %v1708_v0  ;;  %v378_v1 = vor.u32 %v377_v3, %v373_v45  ;;  %v383_v8 = vrot.slane %v381_v49, 5 }
  0x36   : > { %v456_v63 = vsel %vm1939_vm2, %v451_v48, %v455_v32  ;;  %v460_v9 = vrot.slane %v458_v50, 4  ;;  %v369_v4 = vrot.slane %v368_v52, 4  ;;  %v463_v16 = vrot.slane %v461_v54, 5  ;;  %1595 = vmatprep.subr.bf16.mxu1 %v1710_v37 }
  0x37   : > { %v1448_v11 = vcombine.low %v446_v43, %v456_v63  ;;  %v469_v17 = vrot.slane %v467_v55, 5  ;;  %v379_v18 = vrot.slane %v378_v1, 4  ;;  %v473_v22 = vrot.slane %v471_v58, 4  ;;  %v835_v63 = vld [vmem:[%s1894_s26 + $0x30] sm:$0xe] }
  0x38   : > { %v477_v23 = vshll.u32 %v2055_v46, 16  ;;  %v1480_v0 = vrot.slane %v831_v47, 9  ;;  %v870_v31 = vrot.slane %v1944_v39, 5  ;;  %v374_v32 = vsel %vm1939_vm2, %v369_v4, %v373_v45 }
  0x39   : > { %1587 = vmatprep.mubr.msk.bf16.mxu1 %vm530_vm3, %v1448_v11  ;;  %v464_v35 = vor.u32 %v463_v16, %v460_v9  ;;  %v860_v36 = vrot.slane %v1905_v6, 5  ;;  %v384_v34 = vsel %vm1939_vm2, %v379_v18, %v383_v8  ;;  %v474_v38 = vor.u32 %v473_v22, %v469_v17  ;;  %1596 = vmatpush3.bf16.msra.mxu1 %v1710_v37 }
  0x3a   : > { %v479_v40 = vrot.slane %v477_v23, 5  ;;  %v1481_v41 = vrot.slane %v832_v59, 9  ;;  %v1445_v42 = vcombine.low %v374_v32, %v384_v34  ;;  %v1461_v45 = vcombine.low %v1902_v5, %v1905_v6  ;;  %v834_v59 = vld [vmem:[%s1894_s26 + $0x24] sm:$0xe] }
  0x3b   : > { %v465_v43 = vrot.slane %v464_v35, 4  ;;  %v861_v39 = vsel %vm2070_vm6, %v1480_v0, %v860_v36  ;;  %v862_v44 = vrot.slane %v860_v36, 4  ;;  %v475_v47 = vrot.slane %v474_v38, 4 }
  0x3c   : > { %v868_v48 = vsel %vm2070_vm6, %v1481_v41, %v867_v60  ;;  %v869_v37 = vrot.slane %v867_v60, 4  ;;  %1580 = vmatmul.mubr.msk.bf16.gmra.mxu0 %vm530_vm3, %v1445_v42  ;;  %v1482_v5 = vrot.slane %v833_v26, 9  ;;  %v874_v6 = vrot.slane %v1978_v13, 5 }
  0x3d   : > { %v470_v3 = vsel %vm1939_vm2, %v465_v43, %v469_v17  ;;  %v864_v49 = vsel %vm2070_vm6, %v862_v44, %v863_v57  ;;  %v480_v50 = vsel %vm1939_vm2, %v475_v47, %v479_v40  ;;  %v877_v54 = vrot.slane %v1983_v20, 5 }
  0x3e   : > { %v1494_v52 = vcombine.low %v861_v39, %v864_v49  ;;  %v871_v60 = vsel %vm2070_vm6, %v869_v37, %v870_v31  ;;  %v1449_v55 = vcombine.low %v470_v3, %v480_v50  ;;  %v875_v58 = vsel %vm2070_vm6, %v1482_v5, %v874_v6  ;;  %v1726_v50 = vld [vmem:[%s2314_s3 + $0x8] sm:$0xff]  }
  0x3f   : > { %v876_v7 = vrot.slane %v874_v6, 4  ;;  %v881_v57 = vrot.slane %v2027_v10, 5  ;;  %v1495_v30 = vcombine.low %v868_v48, %v871_v60  ;;  %v888_v8 = vrot.slane %v1919_v14, 5 }
  0x40   : > { %1619 = vmatprep.mubr.msk.bf16.mxu0 %vm530_vm3, %v1494_v52  ;;  %1588 = vmatmul.mubr.msk.bf16.gmra.mxu1 %vm530_vm3, %v1449_v55  ;;  %v1483_v9 = vrot.slane %v834_v59, 9  ;;  %v884_v4 = vrot.slane %v2031_v19, 5  ;;  %v891_v16 = vrot.slane %v1922_v15, 5  ;;  %v1484_v17 = vrot.slane %v835_v63, 9  ;;  %v1727_v52 = vld [vmem:[%s2314_s3] sm:$0xff]  }
  0x41   : > { %v878_v1 = vsel %vm2070_vm6, %v876_v7, %v877_v54  ;;  %1597 = vmatprep.mubr.msk.bf16.mxu1 %vm530_vm3, %v1461_v45  ;;  %v883_v11 = vrot.slane %v881_v57, 4  ;;  %v890_v18 = vrot.slane %v888_v8, 4  ;;  %v1462_v22 = vcombine.low %v1932_v28, %v1935_v29  ;;  %v836_v29 = vld [vmem:[%s1894_s26 + $0x3c] sm:$0xe] }
  0x42   : > { %v1496_v20 = vcombine.low %v875_v58, %v878_v1  ;;  %v1463_v23 = vcombine.low %v1973_v2, %v1978_v13  ;;  %v882_v0 = vsel %vm2070_vm6, %v1483_v9, %v881_v57  ;;  %v895_v15 = vrot.slane %v1959_v56, 5  ;;  %v837_v2 = vld [vmem:[%s1894_s26 + $0x48] sm:$0xe] }
  0x43   : > { %v885_v19 = vsel %vm2070_vm6, %v883_v11, %v884_v4  ;;  %v889_v26 = vsel %vm2070_vm6, %v1484_v17, %v888_v8  ;;  %v892_v28 = vsel %vm2070_vm6, %v890_v18, %v891_v16  ;;  %v902_v31 = vrot.slane %v1996_v33, 5 }
  0x44   : > { %1620 = vmatmul.mubr.msk.bf16.vlgmr.msra.gmra.mxu0 %vm530_vm3, %v1495_v30  ;;  %v1497_v13 = vcombine.low %v882_v0, %v885_v19  ;;  %v1498_v32 = vcombine.low %v889_v26, %v892_v28  ;;  %v1485_v35 = vrot.slane %v836_v29, 9  ;;  %v897_v36 = vrot.slane %v895_v15, 4 }
  0x45   : > { %1623 = vmatprep.mubr.msk.bf16.mxu0 %vm530_vm3, %v1496_v20  ;;  %v898_v34 = vrot.slane %v1967_v61, 5  ;;  %v1486_v38 = vrot.slane %v837_v2, 9  ;;  %v904_v40 = vrot.slane %v902_v31, 4  ;;  %v905_v41 = vrot.slane %v2009_v53, 5 }
  0x46   : > { %v1464_v42 = vcombine.low %v2015_v62, %v2027_v10  ;;  %v1465_v43 = vcombine.low %v1915_v12, %v1919_v14  ;;  %v896_v39 = vsel %vm2070_vm6, %v1485_v35, %v895_v15  ;;  %v909_v44 = vrot.slane %v2040_v27, 5  ;;  %v838_v10 = vld [vmem:[%s1894_s26 + $0x54] sm:$0xe]  ;;  %s1732_s26 = sshll.u32 %s1792_s25, 4  ;;  %s1733_s26 = int_to_ptr.vmem [resolvable:$false] %s1732_s26 }
  0x47   : > { %v899_v61 = vsel %vm2070_vm6, %v897_v36, %v898_v34  ;;  %v903_v53 = vsel %vm2070_vm6, %v1486_v38, %v902_v31  ;;  %v906_v62 = vsel %vm2070_vm6, %v904_v40, %v905_v41  ;;  %v1487_v47 = vrot.slane %v838_v10, 9  ;;  %s1734_s28 = scalar_lea.vmem %s1733_s26, 256  ;;  %p1735_p0 = scmp.lt.s32.totalorder %s2272_s15, %s1733_s26 }
  0x48   : > { %1598 = vmatmul.mubr.msk.bf16.vlgmr.msra.gmra.mxu1 %vm530_vm3, %v1462_v22  ;;  %v1499_v12 = vcombine.low %v896_v39, %v899_v61  ;;  %v1500_v14 = vcombine.low %v903_v53, %v906_v62  ;;  %v911_v45 = vrot.slane %v909_v44, 4  ;;  %v912_v48 = vrot.slane %v2055_v46, 5  ;;  %v1724_v46 = vld [vmem:[%s2314_s3 + $0x18] sm:$0xff]   ;;  %p1736_p1 = scmp.lt.s32.totalorder %s1734_s28, %s1728_s20 }
  0x49   : > { %1601 = vmatprep.mubr.msk.bf16.mxu1 %vm530_vm3, %v1463_v23  ;;  %v1466_v37 = vcombine.low %v1955_v51, %v1959_v56  ;;  %v1467_v3 = vcombine.low %v1990_v25, %v1996_v33  ;;  %v910_v49 = vsel %vm2070_vm6, %v1487_v47, %v909_v44  ;;  %v1468_v51 = vcombine.low %v2034_v21, %v2040_v27  ;;  %v1720_v56 = vld [vmem:[%s2314_s3 + $0x38] sm:$0xff]   ;;  %v1721_v33 = vld [vmem:[%s2314_s3 + $0x30] sm:$0xff]   ;;  %v1722_v21 = vld [vmem:[%s2314_s3 + $0x28] sm:$0xff]  }
  0x4a   : > { %v913_v5 = vsel %vm2070_vm6, %v911_v45, %v912_v48  ;;  %v1790_v25 = vmov 0.0   ;;  %v1723_v27 = vld [vmem:[%s2314_s3 + $0x20] sm:$0xff]   ;;  %vm1260_vm13 = vcmask 1046534   ;;  %vm1263_vm14 = vcmask 1047559   ;;  %p1737_p2 = por %p1736_p1, %p1735_p0 }
  0x4b   : > { %v1501_v6 = vcombine.low %v910_v49, %v913_v5  ;;  %1635 = vmatprep.subr.bf16.mxu1 %v1790_v25 }
  0x4c   : > { %1624 = vmatmul.mubr.msk.bf16.gmra.mxu0 %vm530_vm3, %v1497_v13  ;;  %1636 = vmatpush3.bf16.msra.mxu1 %v1720_v56  ;;  %v2218_v13 = vld [vmem:[%s2316_s5] sm:$0xff]  ;;  %p1738_p3 = pnand %p1737_p2, %p1731_p13 }
  0x4d   : > { %1627 = vmatprep.mubr.msk.bf16.mxu0 %vm530_vm3, %v1498_v32  ;;  %1637 = vmatprep.subr.bf16.mxu1 %v1790_v25  ;;  %v2223_v32 = vld [vmem:[%s2316_s5 + $0x8] sm:$0xff] }
  0x50   : > { %1602 = vmatmul.mubr.msk.bf16.gmra.mxu1 %vm530_vm3, %v1464_v42 }
  0x51   : > { %1605 = vmatprep.mubr.msk.bf16.mxu1 %vm530_vm3, %v1465_v43  ;;  %1638 = vmatpush3.bf16.msra.mxu1 %v1721_v33 }
  0x52   : > { %1639 = vmatprep.subr.bf16.mxu1 %v1790_v25 }
  0x54   : > { %1628 = vmatmul.mubr.msk.bf16.gmra.mxu0 %vm530_vm3, %v1499_v12 }
  0x55   : > { %1631 = vmatprep.mubr.msk.bf16.mxu0 %vm530_vm3, %v1500_v14  ;;  %1640 = vmatpush3.bf16.msra.mxu1 %v1722_v21 }
  0x56   : > { %1641 = vmatprep.subr.bf16.mxu1 %v1790_v25 }
  0x58   : > { %1606 = vmatmul.mubr.msk.bf16.gmra.mxu1 %vm530_vm3, %v1466_v37 }
  0x59   : > { %1609 = vmatprep.mubr.msk.bf16.mxu1 %vm530_vm3, %v1467_v3  ;;  %1642 = vmatpush3.bf16.msra.mxu1 %v1723_v27 }
  0x5a   : > { %1643 = vmatprep.subr.bf16.mxu1 %v1790_v25 }
  0x5c   : > { %1632 = vmatmul.mubr.msk.bf16.gmra.mxu0 %vm530_vm3, %v1501_v6 }
  0x5d   : > { %1644 = vmatpush3.bf16.msra.mxu1 %v1724_v46 }
  0x5e   : > { %1645 = vmatprep.subr.bf16.mxu1 %v1790_v25 }
  0x60   : > { %1610 = vmatmul.mubr.msk.bf16.gmra.mxu1 %vm530_vm3, %v1468_v51 }
  0x61   : > { %1646 = vmatpush3.bf16.msra.mxu1 %v1725_v24  ;;  %1651 = vmatprep.mubr.msk.bf16.mxu1 %vm1791_vm7, %v1790_v25 }
  0x62   : > { %1647 = vmatprep.subr.bf16.mxu1 %v1790_v25 }
  0x65   : > { %1648 = vmatpush3.bf16.msra.mxu1 %v1726_v50 }
  0x66   : > { %1649 = vmatprep.subr.bf16.mxu1 %v1790_v25 }
  0x69   : > { %1650 = vmatpush3.bf16.msra.mxu1 %v1727_v52 }
  0xeb   : > { %v1577_v60 = vpop.f32.mrf.mxu0 }
  0xed   : > { %v589_v55 = vpop.f32.mrf.mxu0 }
  0xef   : > { %v1578_v7 = vpop.f32.mrf.mxu0 }
  0xf0   : > { %v2199_v54 = vpop.f32.mrf.mxu1 }
  0xf1   : > { %v592_v57 = vpop.f32.mrf.mxu0 }
  0xf2   : > { %v2201_v58 = vpop.f32.mrf.mxu1 }
  0xf4   : > { %v2203_v59 = vpop.f32.mrf.mxu1 }
  0xf6   : > { %v2205_v63 = vpop.f32.mrf.mxu1 }
  0xfc   : > { %v1581_v30 = vpop.f32.mrf.mxu0 }
  0xfe   : > { %v605_v1 = vpop.f32.mrf.mxu0 }
 0x100   : > { %v2207_v8 = vpop.f32.mrf.mxu1  ;;  %v1582_v20 = vpop.f32.mrf.mxu0 }
 0x102   : > { %v2209_v9 = vpop.f32.mrf.mxu1  ;;  %v608_v11 = vpop.f32.mrf.mxu0 }
 0x104   : > { %v2211_v4 = vpop.f32.mrf.mxu1  ;;  %v1621_v16 = vpop.f32.mrf.mxu0 }
 0x106   : > { %v2213_v17 = vpop.f32.mrf.mxu1  ;;  %v1021_v18 = vpop.f32.mrf.mxu0 }
 0x108   : > { %v1599_v22 = vpop.f32.mrf.mxu1  ;;  %v1622_v23 = vpop.f32.mrf.mxu0 }
 0x109   : > { %v777_v0 = vadd.f32 %v1599_v22, %v1577_v60 }
 0x10a   : > { %v768_v19 = vpop.f32.mrf.mxu1  ;;  %v1024_v15 = vpop.f32.mrf.mxu0 }
 0x10b   : > { %v769_v26 = vadd.f32 %v768_v19, %v589_v55  ;;  %v1086_v31 = vadd.f32 %v1621_v16, %v777_v0 }
 0x10c   : > { %v1600_v28 = vpop.f32.mrf.mxu1  ;;  %v1625_v29 = vpop.f32.mrf.mxu0 }
 0x10d   : > { %v780_v2 = vadd.f32 %v1600_v28, %v1578_v7  ;;  %v1084_v34 = vadd.f32 %v1021_v18, %v769_v26  ;;  %v1104_v43 = vadd.f32 %v2218_v13, %v1086_v31 }
 0x10e   : > { %v771_v35 = vpop.f32.mrf.mxu1  ;;  %v1037_v36 = vpop.f32.mrf.mxu0 }
 0x10f   : > { %v1087_v38 = vadd.f32 %v1622_v23, %v780_v2  ;;  %v772_v40 = vadd.f32 %v771_v35, %v592_v57  ;;  %v1102_v10 = vadd.f32 %v2218_v13, %v1084_v34 }
 0x110   : > { %v1603_v41 = vpop.f32.mrf.mxu1  ;;  %v1626_v42 = vpop.f32.mrf.mxu0 }
 0x111   : > { %v1105_v39 = vadd.f32 %v2223_v32, %v1087_v38  ;;  %v1085_v61 = vadd.f32 %v1024_v15, %v772_v40  ;;  %v793_v44 = vadd.f32 %v1603_v41, %v1581_v30 }
 0x112   : > { %v784_v53 = vpop.f32.mrf.mxu1  ;;  %v1040_v62 = vpop.f32.mrf.mxu0 }
 0x113   : > { %v1125_v12 = vmax.f32 %v1104_v43, %v1105_v39  ;;  %v1103_v14 = vadd.f32 %v2223_v32, %v1085_v61  ;;  %v785_v47 = vadd.f32 %v784_v53, %v605_v1  ;;  %v1090_v49 = vadd.f32 %v1625_v29, %v793_v44 }
 0x114   : > { %v1604_v45 = vpop.f32.mrf.mxu1  ;;  %v1629_v48 = vpop.f32.mrf.mxu0 }
 0x115   : > { %v1126_v37 = vrot.slane %v1125_v12, 4  ;;  %v1118_v3 = vmax.f32 %v1102_v10, %v1103_v14  ;;  %v796_v5 = vadd.f32 %v1604_v45, %v1582_v20  ;;  %v1088_v33 = vadd.f32 %v1037_v36, %v785_v47 }
 0x116   : > { %v787_v6 = vpop.f32.mrf.mxu1  ;;  %v1053_v51 = vpop.f32.mrf.mxu0  ;;  %v1108_v55 = vadd.f32 %v2218_v13, %v1090_v49 }
 0x117   : > { %v1127_v56 = vmax.f32 %v1125_v12, %v1126_v37  ;;  %v1119_v25 = vrot.slane %v1118_v3, 4  ;;  %v788_v21 = vadd.f32 %v787_v6, %v608_v11  ;;  %v1091_v27 = vadd.f32 %v1626_v42, %v796_v5 }
 0x118   : > { %v1607_v46 = vpop.f32.mrf.mxu1  ;;  %v1630_v24 = vpop.f32.mrf.mxu0  ;;  %v1106_v1 = vadd.f32 %v2218_v13, %v1088_v33 }
 0x119   : > { %v1128_v50 = vrot.slane %v1127_v56, 2  ;;  %v1089_v52 = vadd.f32 %v1040_v62, %v788_v21  ;;  %v1120_v60 = vmax.f32 %v1118_v3, %v1119_v25  ;;  %v1109_v7 = vadd.f32 %v2223_v32, %v1091_v27 }
 0x11a   : > { %v809_v57 = vadd.f32 %v1607_v46, %v2199_v54  ;;  %v800_v30 = vpop.f32.mrf.mxu1  ;;  %v1056_v16 = vpop.f32.mrf.mxu0 }
 0x11b   : > { %v1107_v20 = vadd.f32 %v2223_v32, %v1089_v52  ;;  %v1139_v18 = vmax.f32 %v1108_v55, %v1109_v7  ;;  %v801_v11 = vadd.f32 %v800_v30, %v2201_v58  ;;  %v1129_v23 = vmax.f32 %v1127_v56, %v1128_v50 }
 0x11c   : > { %v1608_v22 = vpop.f32.mrf.mxu1  ;;  %v1121_v19 = vrot.slane %v1120_v60, 2  ;;  %v1094_v26 = vadd.f32 %v1629_v48, %v809_v57  ;;  %v1633_v35 = vpop.f32.mrf.mxu0 }
 0x11d   : > { %v1132_v0 = vmax.f32 %v1106_v1, %v1107_v20  ;;  %v1140_v15 = vrot.slane %v1139_v18, 4  ;;  %v812_v28 = vadd.f32 %v1608_v22, %v2203_v59  ;;  %v1092_v54 = vadd.f32 %v1053_v51, %v801_v11 }
 0x11e   : > { %v803_v29 = vpop.f32.mrf.mxu1  ;;  %v1130_v40 = vrot.slane %v1129_v23, 1  ;;  %v1122_v42 = vmax.f32 %v1120_v60, %v1121_v19  ;;  %v1112_v39 = vadd.f32 %v2218_v13, %v1094_v26  ;;  %v1069_v10 = vpop.f32.mrf.mxu0 }
 0x11f   : > { %v1133_v31 = vrot.slane %v1132_v0, 4  ;;  %v804_v2 = vadd.f32 %v803_v29, %v2205_v63  ;;  %v1141_v36 = vmax.f32 %v1139_v18, %v1140_v15  ;;  %v1095_v34 = vadd.f32 %v1630_v24, %v812_v28 }
 0x120   : > { %v1611_v38 = vpop.f32.mrf.mxu1  ;;  %v1110_v53 = vadd.f32 %v2218_v13, %v1092_v54  ;;  %v1131_v37 = vmax.f32 %v1129_v23, %v1130_v40  ;;  %v1123_v5 = vrot.slane %v1122_v42, 1  ;;  %v1634_v25 = vpop.f32.mrf.mxu0 }
 0x121   : > { %v1134_v41 = vmax.f32 %v1132_v0, %v1133_v31  ;;  %v1093_v58 = vadd.f32 %v1056_v16, %v804_v2  ;;  %v1142_v43 = vrot.slane %v1141_v36, 2  ;;  %v1113_v61 = vadd.f32 %v2223_v32, %v1095_v34 }
 0x122   : > { %v816_v44 = vpop.f32.mrf.mxu1  ;;  %v825_v63 = vadd.f32 %v1611_v38, %v2207_v8  ;;  %v2246_v8 = vld [vmem:[%s2313_s2] ss:$0 sm:$0xff]  ;;  %v1124_v57 = vmax.f32 %v1122_v42, %v1123_v5  ;;  %v1072_v20 = vpop.f32.mrf.mxu0 }
 0x123   : > { %v1135_v59 = vrot.slane %v1134_v41, 2  ;;  %v1111_v62 = vadd.f32 %v2223_v32, %v1093_v58  ;;  %v1153_v12 = vmax.f32 %v1112_v39, %v1113_v61  ;;  %v1143_v47 = vmax.f32 %v1141_v36, %v1142_v43 }
 0x124   : > { %v1612_v14 = vpop.f32.mrf.mxu1  ;;  %v817_v49 = vadd.f32 %v816_v44, %v2209_v9  ;;  %v1098_v56 = vadd.f32 %v1633_v35, %v825_v63  ;;  %v1182_v7 = vadd.f32 %v2246_v8, %v1131_v37  ;;  %v1181_v28 = vadd.f32 %v2246_v8, %v1124_v57 }
 0x125   : > { %v1136_v45 = vmax.f32 %v1134_v41, %v1135_v59  ;;  %v1146_v48 = vmax.f32 %v1110_v53, %v1111_v62  ;;  %v1154_v3 = vrot.slane %v1153_v12, 4  ;;  %v828_v27 = vadd.f32 %v1612_v14, %v2211_v4 }
 0x126   : > { %v819_v33 = vpop.f32.mrf.mxu1  ;;  %v1144_v46 = vrot.slane %v1143_v47, 1  ;;  %v1096_v60 = vadd.f32 %v1069_v10, %v817_v49  ;;  %v1116_v1 = vadd.f32 %v2218_v13, %v1098_v56  ;;  %v1190_v26 = vmax.f32 %v1182_v7, 0.0 }
 0x127   : > { %v1137_v6 = vrot.slane %v1136_v45, 1  ;;  %v1147_v51 = vrot.slane %v1146_v48, 4  ;;  %v1155_v21 = vmax.f32 %v1153_v12, %v1154_v3  ;;  %v1099_v9 = vadd.f32 %v1634_v25, %v828_v27 }
 0x128   : > { %v820_v55 = vadd.f32 %v819_v33, %v2213_v17  ;;  %v1145_v22 = vmax.f32 %v1143_v47, %v1144_v46  ;;  %v1114_v19 = vadd.f32 %v2218_v13, %v1096_v60  ;;  %v1198_v41 = vpack.c.bf16 %v1190_v26, %v1190_v26 }
 0x129   : > { %v1138_v24 = vmax.f32 %v1136_v45, %v1137_v6  ;;  %v1148_v50 = vmax.f32 %v1146_v48, %v1147_v51  ;;  %v1156_v52 = vrot.slane %v1155_v21, 2  ;;  %v1117_v4 = vadd.f32 %v2223_v32, %v1099_v9 }
 0x12a   : > { %v1097_v11 = vadd.f32 %v1072_v20, %v820_v55  ;;  %v1184_v35 = vadd.f32 %v2246_v8, %v1145_v22  ;;  %v1189_v58 = vmax.f32 %v1181_v28, 0.0  ;;  %v1237_v62 = vunpack.c.l.b16 %v1198_v41 }
 0x12b   : > { %v1149_v30 = vrot.slane %v1148_v50, 2  ;;  %v1183_v16 = vadd.f32 %v2246_v8, %v1138_v24  ;;  %v1157_v18 = vmax.f32 %v1155_v21, %v1156_v52  ;;  %v1167_v15 = vmax.f32 %v1116_v1, %v1117_v4 }
 0x12c   : > { %v1115_v17 = vadd.f32 %v2223_v32, %v1097_v11  ;;  %v1192_v39 = vmax.f32 %v1184_v35, 0.0  ;;  %v1197_v63 = vpack.c.bf16 %v1189_v58, %v1189_v58  ;;  %v1244_v49 = vrot.slane %v1237_v62, 7 }
 0x12d   : > { %v1150_v23 = vmax.f32 %v1148_v50, %v1149_v30  ;;  %v1158_v0 = vrot.slane %v1157_v18, 1  ;;  %v1191_v31 = vmax.f32 %v1183_v16, 0.0  ;;  %v1168_v54 = vrot.slane %v1167_v15, 4 }
 0x12e   : > { %v1160_v2 = vmax.f32 %v1114_v19, %v1115_v17  ;;  %v1200_v45 = vpack.c.bf16 %v1192_v39, %v1192_v39  ;;  %v1236_v5 = vunpack.c.l.b16 %v1197_v63  ;;  %v1514_v19 = vld [vmem:[%s2315_s4] ss:$0 sm:$0xff] }
 0x12f   : > { %v1151_v29 = vrot.slane %v1150_v23, 1  ;;  %v1159_v36 = vmax.f32 %v1157_v18, %v1158_v0  ;;  %v1169_v38 = vmax.f32 %v1167_v15, %v1168_v54  ;;  %v1199_v42 = vpack.c.bf16 %v1191_v31, %v1191_v31 }
 0x130   : > { %v1161_v40 = vrot.slane %v1160_v2, 4  ;;  %v1239_v33 = vunpack.c.l.b16 %v1200_v45  ;;  %v1246_v24 = vsel %vm1245_vm8, %v1244_v49, %v1236_v5 }
 0x131   : > { %v1152_v34 = vmax.f32 %v1150_v23, %v1151_v29  ;;  %v1170_v43 = vrot.slane %v1169_v38, 2  ;;  %v1186_v61 = vadd.f32 %v2246_v8, %v1159_v36  ;;  %v1238_v10 = vunpack.c.l.b16 %v1199_v42 }
 0x132   : > { %v1162_v32 = vmax.f32 %v1160_v2, %v1161_v40  ;;  %v1250_v55 = vrot.slane %v1239_v33, 5 }
 0x133   : > { %v1185_v13 = vadd.f32 %v2246_v8, %v1152_v34  ;;  %v1171_v59 = vmax.f32 %v1169_v38, %v1170_v43  ;;  %v1194_v48 = vmax.f32 %v1186_v61, 0.0  ;;  %v1247_v6 = vrot.slane %v1238_v10, 6 }
 0x134   : > { %v1163_v53 = vrot.slane %v1162_v32, 2 }
 0x135   : > { %v1193_v44 = vmax.f32 %v1185_v13, 0.0  ;;  %v1172_v14 = vrot.slane %v1171_v59, 1  ;;  %v1202_v21 = vpack.c.bf16 %v1194_v48, %v1194_v48  ;;  %v1249_v50 = vsel %vm1248_vm9, %v1247_v6, %v1246_v24 }
 0x136   : > { %v1164_v47 = vmax.f32 %v1162_v32, %v1163_v53  ;;  %v1252_v1 = vsel %vm1251_vm10, %v1250_v55, %v1249_v50 }
 0x137   : > { %v1201_v12 = vpack.c.bf16 %v1193_v44, %v1193_v44  ;;  %v1173_v37 = vmax.f32 %v1171_v59, %v1172_v14  ;;  %v1241_v7 = vunpack.c.l.b16 %v1202_v21 }
 0x138   : > { %v1165_v3 = vrot.slane %v1164_v47, 1 }
 0x139   : > { %v1240_v51 = vunpack.c.l.b16 %v1201_v12  ;;  %v1188_v56 = vadd.f32 %v2246_v8, %v1173_v37  ;;  %v1256_v18 = vrot.slane %v1241_v7, 3 }
 0x13a   : > { %v1166_v25 = vmax.f32 %v1164_v47, %v1165_v3 }
 0x13b   : > { %v1196_v27 = vmax.f32 %v1188_v56, 0.0  ;;  %v1253_v52 = vrot.slane %v1240_v51, 4 }
 0x13c   : > { %v1187_v46 = vadd.f32 %v2246_v8, %v1166_v25 }
 0x13d   : > { %v1204_v60 = vpack.c.bf16 %v1196_v27, %v1196_v27  ;;  %v1255_v16 = vsel %vm1254_vm11, %v1253_v52, %v1252_v1 }
 0x13e   : > { %v1195_v9 = vmax.f32 %v1187_v46, 0.0  ;;  %v1258_v11 = vsel %vm1257_vm12, %v1256_v18, %v1255_v16 }
 0x13f   : > { %v1243_v30 = vunpack.c.l.b16 %v1204_v60 }
 0x140   : > { %v1203_v57 = vpack.c.bf16 %v1195_v9, %v1195_v9 }
 0x141   : > { %v1262_v4 = vrot.slane %v1243_v30, 1 }
 0x142   : > { %v1242_v20 = vunpack.c.l.b16 %v1203_v57 }
 0x144   : > { %v1259_v8 = vrot.slane %v1242_v20, 2 }
 0x146   : > { %v1261_v22 = vsel %vm1260_vm13, %v1259_v8, %v1258_v11 }
 0x147   : > { %v1264_v23 = vsel %vm1263_vm14, %v1262_v4, %v1261_v22 }
 0x148   : > { %v1265_v0 = vpack.c.b16 %v1264_v23, %v1264_v23 }
 0x14a   : > { %1652 = vmatmul.mubr.bf16.vlgmr.msra.gmra.mxu1 %v1265_v0 }
 0x20a   : > { %v1349_v15 = vpop.f32.mrf.mxu1 }
 0x20b   : > { %v1350_v17 = vadd.f32 %v1514_v19, %v1349_v15 }
 0x20c   : > { %v1653_v26 = vpop.f32.mrf.mxu1 }
 0x20d   : > { %1355 = vst [vmem:[%s247_s14] sm:$0xff] %v1350_v17 }
 0x20e   : > { %v1352_v28 = vpop.f32.mrf.mxu1 }
 0x20f   : > { %1741 = shalt.err (!%p1738_p3)
}
 0x210   : > { %s1742_s29 = scalar_lea.hbm %s2270_s18, 128  ;;  %s1746_s11 = scalar_lea.hbm %s2317_s6, 384 }
 0x211   : > { %p1743_p4 = scmp.ne.s32.totalorder %s2270_s18, %s1742_s29  ;;  %p1747_p9 = scmp.lt.s32.totalorder %s2270_s18, %s2317_s6 }
 0x212   : > { %p1748_p10 = scmp.lt.s32.totalorder %s1746_s11, %s1742_s29 }
 0x213   : > { %p1744_p7 = pnand %p1743_p4, %p1866_p5 }
 0x214   : > { %p1749_p11 = por %p1748_p10, %p1747_p9 }
 0x215   : > { %p1745_p8 = pneg %p1744_p7 }
 0x217   : > { %p1750_p12 = pnand %p1749_p11, %p1745_p8 }
 0x219   : > { %1753 = shalt.err (!%p1750_p12)
}
 0x21a   : > { %1662 = dma.vmem_to_hbm [thread:$0]  (%p1866_p5), %s2272_s15, 128, %s2270_s18, %s1357_s19   ;;  %v1654_v29 = vpop.f32.mrf.mxu1 }
 0x21b PF: > { %p1668_p13 = scmp.ge.s32.totalorder %s1788_s24, 2  ;;  %s1382_s14 = sand.u32 1, %s1776_s21  }
 0x21c   : > { %s1383_s16 = scalar_lea.sflag [#allocation3], %s1382_s14 }
 0x21d   : > { %p1665_p0 = pnand %p1668_p13, %p1870_p6 }
 0x21f   : > { %p1666_p1 = pneg %p1665_p0 }
 0x221   : > { %1771 = dma.done.wait (%p1666_p1), %s1383_s16, 128  }
 0x222   : > { %1773 = vsyncadd (%p1666_p1), %s1383_s16, 4294967168  ;;  %p16_p2 = scmp.ge.s32.totalorder %s1853_s27, 5   ;;  %s2324_s21 = smov %s1780_s22 }
 0x223   : > { %s2325_s22 = smov %s1784_s23  ;;  %s2326_s23 = smov %s1864_s30 }
 0x224   : > { %s2327_s24 = smov %s1853_s27  ;;  %18 = sbr.rel (!%p16_p2) target bundleno = 3 (0x3), region = 81 }
 0x229   :  { %1388 = vsyncpa [#allocation3], 1 }
 0x22a   :  { %1390 = vsyncpa [#allocation3 + $0x1], 1 }

</bundles_post_ra>
